<compile_context>
chip_gen: v5e
topology: v5e:2x2
jax: 0.10.0
libtpu: 0.0.40
codegen_flags: <defaults>
</compile_context>

<pallas_src>
import functools

import jax
import jax.numpy as jnp
from jax.experimental import pallas as pl
from jax.experimental.pallas import tpu as pltpu

LANE = 128


def _round_up(n, m):
    return ((n + m - 1) // m) * m


def _pad_state(h, units_p):
    """Lane-pad the hidden state to (B, units_p) f32 (no-op if already padded)."""
    h = h.astype(jnp.float32)
    B, u = h.shape
    if u == units_p:
        return h
    return jnp.zeros((B, units_p), jnp.float32).at[:, :u].set(h)


def _compiler_params(vmem_need_bytes, dimension_semantics=None):
    kwargs = {}
    if dimension_semantics is not None:
        kwargs["dimension_semantics"] = dimension_semantics
    # Default scoped VMEM is 16 MiB (v5e) / 32 MiB (v6e, v7x); raise only when needed.
    if vmem_need_bytes > 12 * (1 << 20):
        kwargs["vmem_limit_bytes"] = int(min(vmem_need_bytes + (4 << 20), 100 << 20))
    return pltpu.CompilerParams(**kwargs)


# ---------------------------------------------------------------------------
# Kernels
# ---------------------------------------------------------------------------
def flipflop_cell_kernel(x_ref, h_ref, wx_ref, wh_ref, b_ref, out_ref, *, units_p):
    """Single cell step: two accumulating MXU dots + fused bias + sigmoid + mix."""
    w_dtype = wx_ref.dtype
    pre = jnp.dot(x_ref[...].astype(w_dtype), wx_ref[...],
                  preferred_element_type=jnp.float32)
    pre = pre + jnp.dot(h_ref[...].astype(w_dtype), wh_ref[...],
                        preferred_element_type=jnp.float32)
    pre = pre + b_ref[...]                       # fused bias (1, 2*units_p), f32
    jk = jax.nn.sigmoid(pre)                     # both gates in one EUP pass
    j = jk[:, :units_p]
    k = jk[:, units_p:]
    h = h_ref[...].astype(jnp.float32)
    # j*(1-h) + (1-k)*h == j + h*(1 - j - k)
    out_ref[...] = (j + h * (1.0 - j - k)).astype(out_ref.dtype)


def flipflop_scan_kernel(x_ref, h0_ref, wx_ref, wh_ref, b_ref, out_ref, h_scr,
                         *, units_p):
    """Time-gridded RNN step: weights VMEM-resident, f32 hidden carry in scratch."""
    t = pl.program_id(0)

    @pl.when(t == 0)
    def _():
        h_scr[...] = h0_ref[...].astype(jnp.float32)

    w_dtype = wx_ref.dtype
    h = h_scr[...]                                            # (B, units_p) f32
    pre = jnp.dot(x_ref[0].astype(w_dtype), wx_ref[...],
                  preferred_element_type=jnp.float32)
    pre = pre + jnp.dot(h.astype(w_dtype), wh_ref[...],
                        preferred_element_type=jnp.float32)
    pre = pre + b_ref[...]
    jk = jax.nn.sigmoid(pre)
    j = jk[:, :units_p]
    k = jk[:, units_p:]
    h_new = j + h * (1.0 - j - k)
    h_scr[...] = h_new                                        # carry for step t+1
    out_ref[0] = h_new.astype(out_ref.dtype)


# ---------------------------------------------------------------------------
# Parameter fusion (call ONCE, outside any time loop)
# ---------------------------------------------------------------------------
def prepare_params(params, input_size, units, dtype=jnp.bfloat16):
    """Fold the 4 torch Linear layers into Wx, Wh and one fused f32 bias.

    Wx: (input_size, 2*units_p), Wh: (units_p, 2*units_p); columns [0:units]
    are the j gate, columns [units_p:units_p+units] the k gate.  Padded rows
    and columns are zero, so padded hidden lanes never leak into real outputs.
    dtype defaults to bfloat16 (native MXU dtype on all generations); pass
    jnp.float32 for bit-tight numerics.
    """
    units_p = _round_up(units, LANE)
    N = 2 * units_p

    wx = jnp.zeros((input_size, N), dtype)
    wx = wx.at[:, :units].set(params["j_x_w"].T.astype(dtype))
    wx = wx.at[:, units_p:units_p + units].set(params["k_x_w"].T.astype(dtype))

    wh = jnp.zeros((units_p, N), dtype)
    wh = wh.at[:units, :units].set(params["j_h_w"].T.astype(dtype))
    wh = wh.at[:units, units_p:units_p + units].set(params["k_h_w"].T.astype(dtype))

    b = jnp.zeros((1, N), jnp.float32)
    b = b.at[0, :units].set((params["j_x_b"] + params["j_h_b"]).astype(jnp.float32))
    b = b.at[0, units_p:units_p + units].set(
        (params["k_x_b"] + params["k_h_b"]).astype(jnp.float32))

    return {"wx": wx, "wh": wh, "b": b, "units": units, "units_p": units_p,
            "input_size": input_size}


# ---------------------------------------------------------------------------
# Wrappers
# ---------------------------------------------------------------------------
def flipflop_forward(x, h, fused, *, donate_state=False):
    """One FlipFlop cell step.  Returns (output, [output]) like the torch module."""
    B, input_size = x.shape
    units, units_p = fused["units"], fused["units_p"]
    N = 2 * units_p
    w_dtype = fused["wx"].dtype
    itemsize = jnp.dtype(w_dtype).itemsize

    h_p = _pad_state(h, units_p)

    full = lambda shape: pl.BlockSpec(shape, lambda: (0,) * len(shape))
    cost = pl.CostEstimate(
        flops=2 * B * (input_size + units_p) * N,
        transcendentals=B * N,
        bytes_accessed=(B * input_size * 4 + B * units_p * 4
                        + (input_size + units_p) * N * itemsize + N * 4
                        + B * units_p * 4))
    vmem_need = 2 * ((input_size + units_p + 1) * N * itemsize
                     + B * (input_size + 2 * units_p) * 4)
    alias = {1: 0} if donate_state else {}    # alias padded h buffer with output

    out_p = pl.pallas_call(
        functools.partial(flipflop_cell_kernel, units_p=units_p),
        out_shape=jax.ShapeDtypeStruct((B, units_p), jnp.float32),
        in_specs=[full((B, input_size)),          # x
                  full((B, units_p)),             # h (padded)
                  full((input_size, N)),          # Wx
                  full((units_p, N)),             # Wh
                  full((1, N))],                  # fused bias
        out_specs=full((B, units_p)),
        cost_estimate=cost,
        compiler_params=_compiler_params(vmem_need),
        input_output_aliases=alias,
    )(x, h_p, fused["wx"], fused["wh"], fused["b"])

    out = out_p[:, :units]
    return out, [out]


def _build_scan_call(T, B, input_size, units_p, w_dtype, out_dtype,
                     single_buffer_weights):
    N = 2 * units_p
    itemsize = jnp.dtype(w_dtype).itemsize
    w_mode = ({"pipeline_mode": pl.Buffered(1)} if single_buffer_weights else {})
    const = lambda t: (0, 0)

    in_specs = [
        pl.BlockSpec((1, B, input_size), lambda t: (t, 0, 0)),   # x_t (per-step tile)
        pl.BlockSpec((B, units_p), const),                       # h0 (read at t==0)
        pl.BlockSpec((input_size, N), const, **w_mode),          # Wx (resident)
        pl.BlockSpec((units_p, N), const, **w_mode),             # Wh (resident)
        pl.BlockSpec((1, N), const, **w_mode),                   # bias (resident)
    ]
    out_specs = pl.BlockSpec((1, B, units_p), lambda t: (t, 0, 0))

    cost = pl.CostEstimate(
        flops=2 * T * B * (input_size + units_p) * N,
        transcendentals=T * B * N,
        bytes_accessed=(T * B * input_size * 4 + B * units_p * 4
                        + (input_size + units_p) * N * itemsize + N * 4
                        + T * B * units_p * 4))
    wbuf = 1 if single_buffer_weights else 2
    vmem_need = (wbuf * ((input_size + units_p) * N * itemsize + N * 4)
                 + 2 * B * input_size * 4          # x double buffer
                 + 2 * B * units_p * 4             # h0 buffers
                 + 2 * B * units_p * 4             # out double buffer
                 + B * units_p * 4)                # carry scratch

    return pl.pallas_call(
        functools.partial(flipflop_scan_kernel, units_p=units_p),
        out_shape=jax.ShapeDtypeStruct((T, B, units_p), out_dtype),
        grid=(T,),
        in_specs=in_specs,
        out_specs=out_specs,
        scratch_shapes=[pltpu.VMEM((B, units_p), jnp.float32)],
        cost_estimate=cost,
        compiler_params=_compiler_params(vmem_need, ("arbitrary",)),
    )


def flipflop_scan(xs, h0, fused):
    """Run the FlipFlop cell over a whole sequence with ONE gridded pallas_call.

    xs: (T, B, input_size); h0: (B, units) or (B, units_p).
    Returns (outputs (T, B, units), final_state (B, units)).
    Weights are DMA'd once and stay VMEM-resident across all T steps; the
    hidden state stays lane-padded internally and is sliced once at the end.
    """
    T, B, input_size = xs.shape
    units, units_p = fused["units"], fused["units_p"]
    h0_p = _pad_state(h0, units_p)
    args = (xs, h0_p, fused["wx"], fused["wh"], fused["b"])
    try:
        call = _build_scan_call(T, B, input_size, units_p, fused["wx"].dtype,
                                jnp.float32, single_buffer_weights=True)
        outs_p = jax.block_until_ready(call(*args))
    except Exception:
        # Fallback for jax versions that reject pipeline_mode=pl.Buffered(1).
        call = _build_scan_call(T, B, input_size, units_p, fused["wx"].dtype,
                                jnp.float32, single_buffer_weights=False)
        outs_p = call(*args)
    outs = outs_p[..., :units]          # single slice AFTER the whole scan
    return outs, outs[-1]


# ---------------------------------------------------------------------------
# Reference + self-test
# ---------------------------------------------------------------------------
def init_params(key, input_size, units, dtype=jnp.float32):
    """Deterministic synthetic parameters matching nn.Linear (out, in) shapes."""
    keys = jax.random.split(key, 8)
    scale = 0.1
    return {
        "j_h_w": scale * jax.random.normal(keys[0], (units, units), dtype),
        "j_h_b": scale * jax.random.normal(keys[1], (units,), dtype),
        "j_x_w": scale * jax.random.normal(keys[2], (units, input_size), dtype),
        "j_x_b": scale * jax.random.normal(keys[3], (units,), dtype),
        "k_h_w": scale * jax.random.normal(keys[4], (units, units), dtype),
        "k_h_b": scale * jax.random.normal(keys[5], (units,), dtype),
        "k_x_w": scale * jax.random.normal(keys[6], (units, input_size), dtype),
        "k_x_b": scale * jax.random.normal(keys[7], (units,), dtype),
    }


def _reference_step(x, h, params):
    j = jax.nn.sigmoid(x @ params["j_x_w"].T + params["j_x_b"]
                       + h @ params["j_h_w"].T + params["j_h_b"])
    k = jax.nn.sigmoid(x @ params["k_x_w"].T + params["k_x_b"]
                       + h @ params["k_h_w"].T + params["k_h_b"])
    return j * (1 - h) + (1 - k) * h


def _reference_scan(xs, h0, params):
    def step(h, x):
        h_new = _reference_step(x, h, params)
        return h_new, h_new
    _, hs = jax.lax.scan(step, h0, xs)
    return hs


if __name__ == "__main__":
    B, input_size, units, T = 8, 16, 32, 8
    key = jax.random.PRNGKey(0)
    kx, kh, kp, ks = jax.random.split(key, 4)

    x = jax.random.normal(kx, (B, input_size), jnp.float32)
    h = jax.nn.sigmoid(jax.random.normal(kh, (B, units), jnp.float32))  # prev output in [0,1]
    xs = jax.random.normal(ks, (T, B, input_size), jnp.float32)
    params = init_params(kp, input_size, units)

    # --- single cell step, f32 weights: tight check against the torch math ---
    fused_f32 = prepare_params(params, input_size, units, dtype=jnp.float32)
    out, new_states = flipflop_forward(x, h, fused_f32)
    out = jax.block_until_ready(out)
    ref = _reference_step(x, h, params)
    assert out.shape == (B, units)
    assert new_states[0].shape == (B, units)
    assert jnp.allclose(out, ref, atol=1e-5, rtol=1e-5), "cell step mismatch (f32)"

    # --- full-sequence scan (time = grid axis), f32 weights ---
    seq_f32, last_f32 = flipflop_scan(xs, h, fused_f32)
    seq_f32 = jax.block_until_ready(seq_f32)
    ref_seq = _reference_scan(xs, h, params)
    assert seq_f32.shape == (T, B, units)
    assert last_f32.shape == (B, units)
    assert jnp.allclose(seq_f32, ref_seq, atol=1e-4, rtol=1e-4), "scan mismatch (f32)"

    # --- full-sequence scan, bf16 weights (default; halves weight DMA bytes) ---
    fused_bf16 = prepare_params(params, input_size, units)   # bfloat16 default
    seq_bf16, _ = flipflop_scan(xs, h, fused_bf16)
    seq_bf16 = jax.block_until_ready(seq_bf16)
    assert jnp.allclose(seq_bf16, ref_seq, atol=2e-2, rtol=0), "scan mismatch (bf16)"

    print("KERNEL_OK")
</pallas_src>

<mosaic_0001>
module attributes {stable_mosaic.version = 11 : i64} {
  func.func @flipflop_cell_kernel(%arg0: memref<8x16xf32, #tpu.memory_space<vmem>>, %arg1: memref<8x128xf32, #tpu.memory_space<vmem>>, %arg2: memref<16x256xf32, #tpu.memory_space<vmem>>, %arg3: memref<128x256xf32, #tpu.memory_space<vmem>>, %arg4: memref<1x256xf32, #tpu.memory_space<vmem>>, %arg5: memref<8x128xf32, #tpu.memory_space<vmem>>) attributes {dimension_semantics = [], scalar_prefetch = 0 : i64, scratch_operands = 0 : i64, tpu.core_type = #tpu.core_type<tc>} {
    %c0 = arith.constant 0 : index
    %c0_0 = arith.constant 0 : index
    %0 = vector.load %arg0[%c0, %c0_0] : memref<8x16xf32, #tpu.memory_space<vmem>>, vector<8x16xf32>
    %c0_1 = arith.constant 0 : index
    %c0_2 = arith.constant 0 : index
    %1 = vector.load %arg2[%c0_1, %c0_2] : memref<16x256xf32, #tpu.memory_space<vmem>>, vector<16x256xf32>
    %cst = arith.constant dense<0.000000e+00> : vector<8x256xf32>
    %2 = tpu.matmul %0, %1, %cst {dimension_numbers = #tpu.dot_dimension_numbers<[1], [0], [0], [1], [0, 0, 1, 1], [], []>} : vector<8x16xf32>, vector<16x256xf32>, vector<8x256xf32> -> vector<8x256xf32>
    %c0_3 = arith.constant 0 : index
    %c0_4 = arith.constant 0 : index
    %3 = vector.load %arg1[%c0_3, %c0_4] : memref<8x128xf32, #tpu.memory_space<vmem>>, vector<8x128xf32>
    %c0_5 = arith.constant 0 : index
    %c0_6 = arith.constant 0 : index
    %4 = vector.load %arg3[%c0_5, %c0_6] : memref<128x256xf32, #tpu.memory_space<vmem>>, vector<128x256xf32>
    %cst_7 = arith.constant dense<0.000000e+00> : vector<8x256xf32>
    %5 = tpu.matmul %3, %4, %cst_7 {dimension_numbers = #tpu.dot_dimension_numbers<[1], [0], [0], [1], [0, 0, 1, 1], [], []>} : vector<8x128xf32>, vector<128x256xf32>, vector<8x256xf32> -> vector<8x256xf32>
    %6 = arith.addf %2, %5 : vector<8x256xf32>
    %c0_8 = arith.constant 0 : index
    %c0_9 = arith.constant 0 : index
    %7 = vector.load %arg4[%c0_8, %c0_9] : memref<1x256xf32, #tpu.memory_space<vmem>>, vector<1x256xf32>
    %8 = vector.broadcast %7 : vector<1x256xf32> to vector<8x256xf32>
    %9 = arith.addf %6, %8 : vector<8x256xf32>
    %10 = arith.negf %9 : vector<8x256xf32>
    %11 = math.exp %10 : vector<8x256xf32>
    %cst_10 = arith.constant 1.000000e+00 : f32
    %12 = vector.broadcast %cst_10 : f32 to vector<8x256xf32>
    %13 = arith.addf %12, %11 : vector<8x256xf32>
    %14 = arith.divf %12, %13 : vector<8x256xf32>
    %15 = vector.extract_strided_slice %14 {offsets = [0, 0], sizes = [8, 128], strides = [1, 1]} : vector<8x256xf32> to vector<8x128xf32>
    %16 = vector.extract_strided_slice %14 {offsets = [0, 128], sizes = [8, 128], strides = [1, 1]} : vector<8x256xf32> to vector<8x128xf32>
    %c0_11 = arith.constant 0 : index
    %c0_12 = arith.constant 0 : index
    %17 = vector.load %arg1[%c0_11, %c0_12] : memref<8x128xf32, #tpu.memory_space<vmem>>, vector<8x128xf32>
    %cst_13 = arith.constant 1.000000e+00 : f32
    %18 = vector.broadcast %cst_13 : f32 to vector<8x128xf32>
    %19 = arith.subf %18, %15 : vector<8x128xf32>
    %20 = arith.subf %19, %16 : vector<8x128xf32>
    %21 = arith.mulf %17, %20 : vector<8x128xf32>
    %22 = arith.addf %15, %21 : vector<8x128xf32>
    %c0_14 = arith.constant 0 : index
    %c0_15 = arith.constant 0 : index
    %23 = vector.load %arg5[%c0_14, %c0_15] : memref<8x128xf32, #tpu.memory_space<vmem>>, vector<8x128xf32>
    tpu.vector_store %arg5[%c0_14, %c0_15], %22 {strides = array<i32>} : memref<8x128xf32, #tpu.memory_space<vmem>>, vector<8x128xf32>,
    return
  }
}

</mosaic_0001>

<bundles_post_ra>
// kernel: tpu_custom_call.1
= control target key start
LH: loop header
LB: loop body
LE: loop exit
PB: predicated region body
PF: predicated region fallthrough
CT: control target
= control target key end

     0   :  { %10 = vsyncpa [#allocation3], 0  ;;  %s474_s0 = inlined_call_operand.hbm [shape: f32[8,16], index: 0, kind: input, shape index: {}]   ;;  %s475_s1 = inlined_call_operand.hbm [shape: f32[8,128], index: 1, kind: input, shape index: {}]   ;;  %s476_s2 = inlined_call_operand.hbm [shape: f32[16,256], index: 2, kind: input, shape index: {}]   ;;  %s477_s3 = inlined_call_operand.hbm [shape: f32[128,256], index: 3, kind: input, shape index: {}]   ;;  %s478_s4 = inlined_call_operand.vmem [shape: f32[1,256], index: 4, kind: input, shape index: {}]   ;;  %s479_s5 = inlined_call_operand.hbm [shape: f32[8,128], index: 5, kind: output, shape index: {}]  }
   0x1   :  { %11 = vsyncpa [#allocation6], 0 }
   0x2   :  { %12 = vsyncpa [#allocation9], 0  ;;  %s30_s20 = sshll.u32 %s475_s1, 4  ;;  %s31_s20 = int_to_ptr.hbm [resolvable:$true] %s30_s20 }
   0x3   :  { %13 = vsyncpa [#allocation4], 0  ;;  %s419_s21 = smov [#allocation5]   ;;  %s19_s25 = sshll.u32 %s474_s0, 4  ;;  %s20_s25 = int_to_ptr.hbm [resolvable:$true] %s19_s25 }
   0x4   :  { %s32_s22 = sshll.u32 %s419_s21, 4  ;;  %s420_s26 = smov [#allocation2]   ;;  %s33_s22 = int_to_ptr.vmem [resolvable:$true] %s32_s22 }
   0x5   :  { %35 = dma.hbm_to_vmem [thread:$0]  %s31_s20, 128, %s33_s22, [#allocation6]  }
   0x6   :  { %s21_s27 = sshll.u32 %s420_s26, 4  ;;  %s40_s30 = sshll.u32 %s476_s2, 4  ;;  %s22_s27 = int_to_ptr.vmem [resolvable:$true] %s21_s27  ;;  %s41_s30 = int_to_ptr.hbm [resolvable:$true] %s40_s30 }
   0x7   :  { %24 = dma.hbm_to_vmem [thread:$0]  %s20_s25, 128, %s22_s27, [#allocation3]  }
   0x8   :  { %s421_s1 = smov [#allocation7]   ;;  %s53_s9 = sshll.u32 %s477_s3, 4  ;;  %s54_s9 = int_to_ptr.hbm [resolvable:$true] %s53_s9 }
   0x9   :  { %s42_s6 = sshll.u32 %s421_s1, 4  ;;  %s422_s10 = smov 256   ;;  %s43_s6 = int_to_ptr.vmem [resolvable:$true] %s42_s6 }
   0xa   :  { %s423_s0 = smov 16   ;;  %s424_s11 = smov [#allocation8]  }
   0xb   :  { %48 = dma.hbm_to_vmem [thread:$0]  %s41_s30, 512, %s43_s6, [#allocation6], %s422_s10, %s422_s10, %s423_s0  }
   0xc   :  { %s55_s12 = sshll.u32 %s424_s11, 4  ;;  %s56_s12 = int_to_ptr.vmem [resolvable:$true] %s55_s12 }
   0xd   :  { %61 = dma.hbm_to_vmem [thread:$0]  %s54_s9, 4096, %s56_s12, [#allocation9], %s422_s10, %s422_s10, %s423_s0  }
   0xe   :  { %411 = dma.done.wait [#allocation3], 128  }
   0xf   :  { %412 = vsyncadd [#allocation3], 4294967168 }
  0x10   :  { %413 = dma.done.wait [#allocation6], 640  }
  0x11   :  { %414 = vsyncadd [#allocation6], 4294966656 }
  0x12   :  { %415 = dma.done.wait [#allocation9], 4096  }
  0x13   :  { %416 = vsyncadd [#allocation9], 4294963200  ;;  %v116_v0 = vld [vmem:[#allocation8 + $0xf0] sm:$0xff]  ;;  %v117_v1 = vld [vmem:[#allocation8 + $0xf8] sm:$0xff]  ;;  %vm158_vm0 = vcmask 130048   ;;  %s260_s16 = sshll.u32 %s479_s5, 4  ;;  %s261_s16 = int_to_ptr.hbm [resolvable:$true] %s260_s16 }
  0x14   :  { %v114_v2 = vld [vmem:[#allocation8 + $0xe0] sm:$0xff]  ;;  %118 = vmatpush.msra.mxu0 %v116_v0  ;;  %138 = vmatpush.msra.mxu1 %v117_v1  ;;  %v115_v3 = vld [vmem:[#allocation8 + $0xe8] sm:$0xff]  ;;  %v112_v4 = vld [vmem:[#allocation8 + $0xd0] sm:$0xff] }
  0x15   :  { %v113_v5 = vld [vmem:[#allocation8 + $0xd8] sm:$0xff]  ;;  %v110_v6 = vld [vmem:[#allocation8 + $0xc0] sm:$0xff]  ;;  %v111_v7 = vld [vmem:[#allocation8 + $0xc8] sm:$0xff] }
  0x16   :  { %119 = vmatpush.msra.mxu0 %v114_v2  ;;  %139 = vmatpush.msra.mxu1 %v115_v3  ;;  %v108_v8 = vld [vmem:[#allocation8 + $0xb0] sm:$0xff]  ;;  %v109_v9 = vld [vmem:[#allocation8 + $0xb8] sm:$0xff]  ;;  %v106_v10 = vld [vmem:[#allocation8 + $0xa0] sm:$0xff] }
  0x17   :  { %v107_v11 = vld [vmem:[#allocation8 + $0xa8] sm:$0xff]  ;;  %v83_v12 = vld [vmem:[#allocation7 + $0x10] sm:$0xff]  ;;  %v84_v13 = vld [vmem:[#allocation7 + $0x18] sm:$0xff] }
  0x18   :  { %120 = vmatpush.msra.mxu0 %v112_v4  ;;  %140 = vmatpush.msra.mxu1 %v113_v5  ;;  %v81_v14 = vld [vmem:[#allocation7] sm:$0xff]  ;;  %v82_v15 = vld [vmem:[#allocation7 + $0x8] sm:$0xff]  ;;  %v104_v16 = vld [vmem:[#allocation8 + $0x90] sm:$0xff] }
  0x19   :  { %v105_v17 = vld [vmem:[#allocation8 + $0x98] sm:$0xff]  ;;  %176 = vmatpush.msra.mxu2 %v83_v12  ;;  %196 = vmatpush.msra.mxu3 %v84_v13  ;;  %v80_v18 = vld [vmem:[#allocation2] sm:$0xff]  ;;  %v102_v19 = vld [vmem:[#allocation8 + $0x80] sm:$0xff] }
  0x1a   :  { %121 = vmatpush.msra.mxu0 %v110_v6  ;;  %141 = vmatpush.msra.mxu1 %v111_v7  ;;  %v103_v20 = vld [vmem:[#allocation8 + $0x88] sm:$0xff]  ;;  %v100_v21 = vld [vmem:[#allocation8 + $0x70] sm:$0xff]  ;;  %v101_v22 = vld [vmem:[#allocation8 + $0x78] sm:$0xff] }
  0x1b   :  { %177 = vmatpush.msra.mxu2 %v81_v14  ;;  %197 = vmatpush.msra.mxu3 %v82_v15  ;;  %v98_v23 = vld [vmem:[#allocation8 + $0x60] sm:$0xff]  ;;  %v99_v24 = vld [vmem:[#allocation8 + $0x68] sm:$0xff]  ;;  %v96_v25 = vld [vmem:[#allocation8 + $0x50] sm:$0xff] }
  0x1c   :  { %122 = vmatpush.msra.mxu0 %v108_v8  ;;  %142 = vmatpush.msra.mxu1 %v109_v9  ;;  %v97_v26 = vld [vmem:[#allocation8 + $0x58] sm:$0xff]  ;;  %v94_v27 = vld [vmem:[#allocation8 + $0x40] sm:$0xff]  ;;  %v95_v28 = vld [vmem:[#allocation8 + $0x48] sm:$0xff] }
  0x1d   :  { %272 = vmatmul.msk.f32.vlgmr.msra.gmra.mxu2 %vm158_vm0, %v80_v18  ;;  %273 = vmatmul.msk.f32.vlgmr.msra.gmra.mxu3 %vm158_vm0, %v80_v18  ;;  %v92_v29 = vld [vmem:[#allocation8 + $0x30] sm:$0xff]  ;;  %v93_v30 = vld [vmem:[#allocation8 + $0x38] sm:$0xff]  ;;  %v90_v31 = vld [vmem:[#allocation8 + $0x20] sm:$0xff] }
  0x1e   :  { %123 = vmatpush.msra.mxu0 %v106_v10  ;;  %143 = vmatpush.msra.mxu1 %v107_v11  ;;  %v91_v32 = vld [vmem:[#allocation8 + $0x28] sm:$0xff]  ;;  %v88_v33 = vld [vmem:[#allocation8 + $0x10] sm:$0xff]  ;;  %v89_v34 = vld [vmem:[#allocation8 + $0x18] sm:$0xff] }
  0x1f   :  { %v86_v35 = vld [vmem:[#allocation8] sm:$0xff]  ;;  %v87_v36 = vld [vmem:[#allocation8 + $0x8] sm:$0xff]  ;;  %v85_v37 = vld [vmem:[#allocation5] sm:$0xff] }
  0x20   :  { %124 = vmatpush.msra.mxu0 %v104_v16  ;;  %144 = vmatpush.msra.mxu1 %v105_v17  ;;  %v202_v38 = vld [vmem:[%s478_s4] sm:$0x3]  ;;  %s425_s4 = smov [#allocation10]  }
  0x21   :  { %v204_v41 = vperm.slane %v202_v38, 0  ;;  %v205_v42 = vperm.slane %v202_v38, 1  ;;  %s258_s13 = sshll.u32 %s425_s4, 4  ;;  %s259_s13 = int_to_ptr.vmem [resolvable:$true] %s258_s13 }
  0x22   :  { %125 = vmatpush.msra.mxu0 %v102_v19  ;;  %145 = vmatpush.msra.mxu1 %v103_v20 }
  0x24   :  { %126 = vmatpush.msra.mxu0 %v100_v21  ;;  %146 = vmatpush.msra.mxu1 %v101_v22 }
  0x26   :  { %127 = vmatpush.msra.mxu0 %v98_v23  ;;  %147 = vmatpush.msra.mxu1 %v99_v24 }
  0x28   :  { %128 = vmatpush.msra.mxu0 %v96_v25  ;;  %148 = vmatpush.msra.mxu1 %v97_v26 }
  0x2a   :  { %129 = vmatpush.msra.mxu0 %v94_v27  ;;  %149 = vmatpush.msra.mxu1 %v95_v28 }
  0x2c   :  { %130 = vmatpush.msra.mxu0 %v92_v29  ;;  %150 = vmatpush.msra.mxu1 %v93_v30 }
  0x2e   :  { %131 = vmatpush.msra.mxu0 %v90_v31  ;;  %151 = vmatpush.msra.mxu1 %v91_v32 }
  0x30   :  { %132 = vmatpush.msra.mxu0 %v88_v33  ;;  %152 = vmatpush.msra.mxu1 %v89_v34 }
  0x32   :  { %133 = vmatpush.msra.mxu0 %v86_v35  ;;  %153 = vmatpush.msra.mxu1 %v87_v36 }
  0x33   :  { %134 = vmatmul.f32.vlgmr.msra.gmra.mxu0 %v85_v37  ;;  %154 = vmatmul.f32.vlgmr.msra.gmra.mxu1 %v85_v37 }
  0xa0   :  { %v179_v39 = vpop.f32.mrf.mxu2  ;;  %v199_v40 = vpop.f32.mrf.mxu3 }
  0xb0   :  { %v135_v43 = vpop.f32.mrf.mxu0  ;;  %v155_v44 = vpop.f32.mrf.mxu1 }
  0xb1   :  { %v180_v45 = vadd.f32 %v179_v39, %v135_v43  ;;  %v200_v46 = vadd.f32 %v199_v40, %v155_v44 }
  0xb3   :  { %v208_v47 = vadd.f32 %v204_v41, %v180_v45  ;;  %v209_v48 = vadd.f32 %v205_v42, %v200_v46 }
  0xb5   :  { %v274_v49 = vmul.f32 -1.442695, %v208_v47  ;;  %v275_v50 = vmul.f32 -1.442695, %v209_v48 }
  0xb7   :  { %283 = vpow2.f32 %v274_v49 }
  0xb8   :  { %285 = vpow2.f32 %v275_v50 }
  0xbd   :  { %v284_v51 = vpop.eup %283 }
  0xbe   :  { %v286_v52 = vpop.eup %285  ;;  %v216_v53 = vadd.f32 1.0, %v284_v51 }
  0xbf   :  { %v217_v54 = vadd.f32 1.0, %v286_v52 }
  0xc0   :  { %287 = vrcp.f32 %v216_v53  ;;  %v229_v61 = vand.u32 2147483648, %v216_v53  ;;  %v227_v63 = vand.u32 2147483647, %v216_v53  ;;  %vm223_vm3 = vweird.f32 %v216_v53 }
  0xc1   :  { %289 = vrcp.f32 %v217_v54  ;;  %v244_v1 = vand.u32 2147483648, %v217_v54  ;;  %v242_v3 = vand.u32 2147483647, %v217_v54  ;;  %vm238_vm5 = vweird.f32 %v217_v54 }
  0xc2   :  { %v230_v4 = vor.u32 1.1754944e-38, %v229_v61  ;;  %vm228_vm6 = vcmp.eq.f32.partialorder %v227_v63, 8.507059e+37 }
  0xc3   :  { %v245_v9 = vor.u32 1.1754944e-38, %v244_v1  ;;  %vm243_vm8 = vcmp.eq.f32.partialorder %v242_v3, 8.507059e+37 }
  0xc6   :  { %v288_v55 = vpop.eup %287 }
  0xc7   :  { %v290_v56 = vpop.eup %289  ;;  %v219_v57 = vmul.f32 %v288_v55, %v216_v53  ;;  %vm224_vm1 = vweird.f32 %v288_v55 }
  0xc8   :  { %v234_v58 = vmul.f32 %v290_v56, %v217_v54  ;;  %vm239_vm2 = vweird.f32 %v290_v56  ;;  %vm225_vm4 = vmor %vm223_vm3, %vm224_vm1 }
  0xc9   :  { %v220_v59 = vsub.f32 1.0, %v219_v57  ;;  %vm240_vm7 = vmor %vm238_vm5, %vm239_vm2 }
  0xca   :  { %v235_v60 = vsub.f32 1.0, %v234_v58 }
  0xcb   :  { %v221_v62 = vmul.f32 %v288_v55, %v220_v59 }
  0xcc   :  { %v236_v0 = vmul.f32 %v290_v56, %v235_v60 }
  0xcd   :  { %v222_v2 = vadd.f32 %v288_v55, %v221_v62 }
  0xce   :  { %v237_v5 = vadd.f32 %v290_v56, %v236_v0 }
  0xcf   :  { %v226_v6 = vsel %vm225_vm4, %v288_v55, %v222_v2 }
  0xd0   :  { %v231_v7 = vsel %vm228_vm6, %v230_v4, %v226_v6  ;;  %v241_v8 = vsel %vm240_vm7, %v290_v56, %v237_v5 }
  0xd1   :  { %v248_v10 = vsub.f32 1.0, %v231_v7  ;;  %v246_v11 = vsel %vm243_vm8, %v245_v9, %v241_v8 }
  0xd3   :  { %v249_v12 = vsub.f32 %v248_v10, %v246_v11 }
  0xd5   :  { %v250_v13 = vmul.f32 %v249_v12, %v85_v37 }
  0xd7   :  { %v251_v14 = vadd.f32 %v250_v13, %v231_v7 }
  0xd9   :  { %252 = vst [vmem:[#allocation10] sm:$0xff] %v251_v14 }
  0xda   :  { %263 = dma.vmem_to_hbm [thread:$0]  %s259_s13, 128, %s261_s16, [#allocation4]  }
  0xdb   :  { %417 = dma.done.wait [#allocation4], 128  }
  0xdc   :  { %418 = vsyncadd [#allocation4], 4294967168 }
  0xdd   :  { %268 = vsyncpa [#allocation3], 1 }
  0xde   :  { %269 = vsyncpa [#allocation6], 1 }
  0xdf   :  { %270 = vsyncpa [#allocation9], 1 }
  0xe0   :  { %271 = vsyncpa [#allocation4], 1 }

</bundles_post_ra>
